<compile_context>
chip_gen: v7x
topology: tpu7x:2x2x1
jax: 0.10.0
libtpu: 0.0.40
codegen_flags: <defaults>
</compile_context>

<pallas_src>
import functools

import jax
import jax.numpy as jnp
from jax.experimental import pallas as pl
from jax.experimental.pallas import tpu as pltpu


def _round_up(x, m):
    return ((x + m - 1) // m) * m


def _dqn_mlp_kernel(x_ref, w1_ref, b1_ref, w2_ref, b2_ref, w3_ref, b3_ref, o_ref):
    """relu(x@W1+b1) -> relu(.@W2+b2) -> .@W3+b3 on one batch tile."""
    x = x_ref[...]
    h1 = jnp.dot(x, w1_ref[...], preferred_element_type=jnp.float32) + b1_ref[...]
    h1 = jnp.maximum(h1, 0.0)
    h2 = jnp.dot(h1, w2_ref[...], preferred_element_type=jnp.float32) + b2_ref[...]
    h2 = jnp.maximum(h2, 0.0)
    q = jnp.dot(h2, w3_ref[...], preferred_element_type=jnp.float32) + b3_ref[...]
    o_ref[...] = q.astype(o_ref.dtype)


@functools.partial(jax.jit, static_argnames=("max_tile_b",))
def dqn_forward(state, params, *, max_tile_b=8192):
    """state: (B, state_size) f32. params: logical (unpadded) weights/biases.

    Returns (B, action_size) Q-values, identical to the PyTorch forward.
    """
    B, S = state.shape
    H1 = params["w1"].shape[1]          # 64
    H2 = params["w2"].shape[1]          # 8
    A = params["w3"].shape[1]           # action_size

    # Batch tile: big (amortizes per-grid-step overhead, HBM-roofline friendly)
    # but at least 2 grid steps when B > 8 so v7x can shard across both TCs.
    # Per-step VMEM at tile_b=8192: x ~1 MB (2 bufs) + h1 ~2 MB + out ~0.25 MB
    # -> far below even v5e's 16 MiB scoped default.
    if B <= 8:
        tile_b = B                       # single block, equals full batch dim
    else:
        tile_b = min(max_tile_b, _round_up(pl.cdiv(B, 2), 8))
    grid = (pl.cdiv(B, tile_b),)         # partial final block handled by Pallas

    # Advisory cost hint reflecting what the kernel actually moves / computes.
    flops = 2 * B * (S * H1 + H1 * H2 + H2 * A)
    bytes_accessed = 4 * (B * (S + A)
                          + S * H1 + H1 + H1 * H2 + H2 + H2 * A + A)
    cost = pl.CostEstimate(flops=flops, transcendentals=0,
                           bytes_accessed=bytes_accessed)

    # Weights/biases are resident (constant index_map); only activation tiles
    # stream through the grid (auto double-buffered by BlockSpec).
    resident = lambda shape: pl.BlockSpec(shape, lambda i: (0, 0))
    grid_spec = pltpu.PrefetchScalarGridSpec(
        num_scalar_prefetch=0,
        grid=grid,
        in_specs=[
            pl.BlockSpec((tile_b, S), lambda i: (i, 0)),   # x tile
            resident((S, H1)),                             # W1 (S, 64)
            resident((1, H1)),                             # b1
            resident((H1, H2)),                            # W2 (64, 8)
            resident((1, H2)),                             # b2
            resident((H2, A)),                             # W3 (8, A)
            resident((1, A)),                              # b3
        ],
        out_specs=pl.BlockSpec((tile_b, A), lambda i: (i, 0)),
    )

    return pl.pallas_call(
        _dqn_mlp_kernel,
        out_shape=jax.ShapeDtypeStruct((B, A), jnp.float32),
        grid_spec=grid_spec,
        compiler_params=pltpu.CompilerParams(
            dimension_semantics=("parallel",),
            vmem_limit_bytes=32 * 1024 * 1024,
        ),
        cost_estimate=cost,
    )(
        state,
        params["w1"], params["b1"],
        params["w2"], params["b2"],
        params["w3"], params["b3"],
    )


def init_params(key, state_size, action_size):
    """Logical params matching the PyTorch module's init.

    Weights are stored (in_features, out_features) so the kernel computes
    y = x @ W + b  (== PyTorch Linear y = x @ W.T + b).
    """
    k1, k2, k3, k4 = jax.random.split(key, 4)
    # fc1, fc2: weight ~ N(0, 0.1), bias = 0  (matches init_weights()).
    w1 = 0.1 * jax.random.normal(k1, (state_size, 64), dtype=jnp.float32)
    b1 = jnp.zeros((1, 64), dtype=jnp.float32)
    w2 = 0.1 * jax.random.normal(k2, (64, 8), dtype=jnp.float32)
    b2 = jnp.zeros((1, 8), dtype=jnp.float32)
    # fc3: default PyTorch Linear init: U(-1/sqrt(in), 1/sqrt(in)), in=8.
    bound = 1.0 / jnp.sqrt(8.0)
    w3 = jax.random.uniform(k3, (8, action_size), dtype=jnp.float32,
                            minval=-bound, maxval=bound)
    b3 = jax.random.uniform(k4, (1, action_size), dtype=jnp.float32,
                            minval=-bound, maxval=bound)
    return {"w1": w1, "b1": b1, "w2": w2, "b2": b2, "w3": w3, "b3": b3}


def _reference(state, params):
    h1 = jnp.maximum(state @ params["w1"] + params["b1"], 0.0)
    h2 = jnp.maximum(h1 @ params["w2"] + params["b2"], 0.0)
    return h2 @ params["w3"] + params["b3"]


if __name__ == "__main__":
    key = jax.random.PRNGKey(0)
    k_params, k_s1, k_s2, k_s3 = jax.random.split(key, 4)

    state_size = 16
    action_size = 4
    params = init_params(k_params, state_size, action_size)

    # Small batch (single grid step, block equals full batch dim).
    state_a = jax.random.normal(k_s1, (8, state_size), dtype=jnp.float32)
    q_a = jax.block_until_ready(dqn_forward(state_a, params))
    assert q_a.shape == (8, action_size)
    assert jnp.allclose(q_a, _reference(state_a, params), atol=1e-5, rtol=1e-5)

    # Non-tile-aligned batch: 2 grid steps, partial final block, no jnp.pad.
    state_b = jax.random.normal(k_s2, (20, state_size), dtype=jnp.float32)
    q_b = jax.block_until_ready(dqn_forward(state_b, params))
    assert q_b.shape == (20, action_size)
    assert jnp.allclose(q_b, _reference(state_b, params), atol=1e-5, rtol=1e-5)

    # Larger ragged batch: exercises multi-step grid + masked partial block.
    state_c = jax.random.normal(k_s3, (300, state_size), dtype=jnp.float32)
    q_c = jax.block_until_ready(dqn_forward(state_c, params))
    assert q_c.shape == (300, action_size)
    assert jnp.allclose(q_c, _reference(state_c, params), atol=1e-5, rtol=1e-5)

    print("KERNEL_OK")
</pallas_src>

<mosaic_0001>
module attributes {stable_mosaic.version = 11 : i64} {
  func.func @_dqn_mlp_kernel(%arg0: i32, %arg1: memref<8x16xf32, #tpu.memory_space<vmem>>, %arg2: memref<16x64xf32, #tpu.memory_space<vmem>>, %arg3: memref<1x64xf32, #tpu.memory_space<vmem>>, %arg4: memref<64x8xf32, #tpu.memory_space<vmem>>, %arg5: memref<1x8xf32, #tpu.memory_space<vmem>>, %arg6: memref<8x4xf32, #tpu.memory_space<vmem>>, %arg7: memref<1x4xf32, #tpu.memory_space<vmem>>, %arg8: memref<8x4xf32, #tpu.memory_space<vmem>>) attributes {dimension_semantics = [#tpu.dimension_semantics<parallel>], iteration_bounds = array<i64: 1>, scalar_prefetch = 0 : i64, scratch_operands = 0 : i64, tpu.core_type = #tpu.core_type<tc>, window_params = [{transform_indices = @transform_0, window_bounds = array<i64: 8, 16>}, {pipeline_mode = #tpu.pipeline_mode<synchronous>, transform_indices = @transform_1, window_bounds = array<i64: 16, 64>}, {pipeline_mode = #tpu.pipeline_mode<synchronous>, transform_indices = @transform_2, window_bounds = array<i64: 1, 64>}, {pipeline_mode = #tpu.pipeline_mode<synchronous>, transform_indices = @transform_3, window_bounds = array<i64: 64, 8>}, {pipeline_mode = #tpu.pipeline_mode<synchronous>, transform_indices = @transform_4, window_bounds = array<i64: 1, 8>}, {pipeline_mode = #tpu.pipeline_mode<synchronous>, transform_indices = @transform_5, window_bounds = array<i64: 8, 4>}, {pipeline_mode = #tpu.pipeline_mode<synchronous>, transform_indices = @transform_6, window_bounds = array<i64: 1, 4>}, {transform_indices = @transform_7, window_bounds = array<i64: 8, 4>}]} {
    %c0 = arith.constant 0 : index
    %c0_0 = arith.constant 0 : index
    %0 = vector.load %arg1[%c0, %c0_0] : memref<8x16xf32, #tpu.memory_space<vmem>>, vector<8x16xf32>
    %c0_1 = arith.constant 0 : index
    %c0_2 = arith.constant 0 : index
    %1 = vector.load %arg2[%c0_1, %c0_2] : memref<16x64xf32, #tpu.memory_space<vmem>>, vector<16x64xf32>
    %cst = arith.constant dense<0.000000e+00> : vector<8x64xf32>
    %2 = tpu.matmul %0, %1, %cst {dimension_numbers = #tpu.dot_dimension_numbers<[1], [0], [0], [1], [0, 0, 1, 1], [], []>} : vector<8x16xf32>, vector<16x64xf32>, vector<8x64xf32> -> vector<8x64xf32>
    %c0_3 = arith.constant 0 : index
    %c0_4 = arith.constant 0 : index
    %3 = vector.load %arg3[%c0_3, %c0_4] : memref<1x64xf32, #tpu.memory_space<vmem>>, vector<1x64xf32>
    %4 = vector.broadcast %3 : vector<1x64xf32> to vector<8x64xf32>
    %5 = arith.addf %2, %4 : vector<8x64xf32>
    %cst_5 = arith.constant 0.000000e+00 : f32
    %6 = vector.broadcast %cst_5 : f32 to vector<8x64xf32>
    %7 = arith.maximumf %5, %6 : vector<8x64xf32>
    %c0_6 = arith.constant 0 : index
    %c0_7 = arith.constant 0 : index
    %8 = vector.load %arg4[%c0_6, %c0_7] : memref<64x8xf32, #tpu.memory_space<vmem>>, vector<64x8xf32>
    %cst_8 = arith.constant dense<0.000000e+00> : vector<8x8xf32>
    %9 = tpu.matmul %7, %8, %cst_8 {dimension_numbers = #tpu.dot_dimension_numbers<[1], [0], [0], [1], [0, 0, 1, 1], [], []>} : vector<8x64xf32>, vector<64x8xf32>, vector<8x8xf32> -> vector<8x8xf32>
    %c0_9 = arith.constant 0 : index
    %c0_10 = arith.constant 0 : index
    %10 = vector.load %arg5[%c0_9, %c0_10] : memref<1x8xf32, #tpu.memory_space<vmem>>, vector<1x8xf32>
    %11 = vector.broadcast %10 : vector<1x8xf32> to vector<8x8xf32>
    %12 = arith.addf %9, %11 : vector<8x8xf32>
    %cst_11 = arith.constant 0.000000e+00 : f32
    %13 = vector.broadcast %cst_11 : f32 to vector<8x8xf32>
    %14 = arith.maximumf %12, %13 : vector<8x8xf32>
    %c0_12 = arith.constant 0 : index
    %c0_13 = arith.constant 0 : index
    %15 = vector.load %arg6[%c0_12, %c0_13] : memref<8x4xf32, #tpu.memory_space<vmem>>, vector<8x4xf32>
    %cst_14 = arith.constant dense<0.000000e+00> : vector<8x4xf32>
    %16 = tpu.matmul %14, %15, %cst_14 {dimension_numbers = #tpu.dot_dimension_numbers<[1], [0], [0], [1], [0, 0, 1, 1], [], []>} : vector<8x8xf32>, vector<8x4xf32>, vector<8x4xf32> -> vector<8x4xf32>
    %c0_15 = arith.constant 0 : index
    %c0_16 = arith.constant 0 : index
    %17 = vector.load %arg7[%c0_15, %c0_16] : memref<1x4xf32, #tpu.memory_space<vmem>>, vector<1x4xf32>
    %18 = vector.broadcast %17 : vector<1x4xf32> to vector<8x4xf32>
    %19 = arith.addf %16, %18 : vector<8x4xf32>
    %c0_17 = arith.constant 0 : index
    %c0_18 = arith.constant 0 : index
    %20 = vector.load %arg8[%c0_17, %c0_18] : memref<8x4xf32, #tpu.memory_space<vmem>>, vector<8x4xf32>
    tpu.vector_store %arg8[%c0_17, %c0_18], %19 {strides = array<i32>} : memref<8x4xf32, #tpu.memory_space<vmem>>, vector<8x4xf32>,
    return
  }
  func.func @transform_0(%arg0: i32) -> (i32, i32) {
    %c0_i32 = arith.constant 0 : i32
    %c0_i32_0 = arith.constant 0 : i32
    return %arg0, %c0_i32 : i32, i32
  }
  func.func @transform_1(%arg0: i32) -> (i32, i32) {
    %c0_i32 = arith.constant 0 : i32
    %c0_i32_0 = arith.constant 0 : i32
    %c0_i32_1 = arith.constant 0 : i32
    return %c0_i32, %c0_i32_0 : i32, i32
  }
  func.func @transform_2(%arg0: i32) -> (i32, i32) {
    %c0_i32 = arith.constant 0 : i32
    %c0_i32_0 = arith.constant 0 : i32
    %c0_i32_1 = arith.constant 0 : i32
    return %c0_i32, %c0_i32_0 : i32, i32
  }
  func.func @transform_3(%arg0: i32) -> (i32, i32) {
    %c0_i32 = arith.constant 0 : i32
    %c0_i32_0 = arith.constant 0 : i32
    %c0_i32_1 = arith.constant 0 : i32
    return %c0_i32, %c0_i32_0 : i32, i32
  }
  func.func @transform_4(%arg0: i32) -> (i32, i32) {
    %c0_i32 = arith.constant 0 : i32
    %c0_i32_0 = arith.constant 0 : i32
    %c0_i32_1 = arith.constant 0 : i32
    return %c0_i32, %c0_i32_0 : i32, i32
  }
  func.func @transform_5(%arg0: i32) -> (i32, i32) {
    %c0_i32 = arith.constant 0 : i32
    %c0_i32_0 = arith.constant 0 : i32
    %c0_i32_1 = arith.constant 0 : i32
    return %c0_i32, %c0_i32_0 : i32, i32
  }
  func.func @transform_6(%arg0: i32) -> (i32, i32) {
    %c0_i32 = arith.constant 0 : i32
    %c0_i32_0 = arith.constant 0 : i32
    %c0_i32_1 = arith.constant 0 : i32
    return %c0_i32, %c0_i32_0 : i32, i32
  }
  func.func @transform_7(%arg0: i32) -> (i32, i32) {
    %c0_i32 = arith.constant 0 : i32
    %c0_i32_0 = arith.constant 0 : i32
    return %arg0, %c0_i32 : i32, i32
  }
}

</mosaic_0001>

<bundles_post_ra>
// kernel: dqn_forward.1
= control target key start
LH: loop header
LB: loop body
LE: loop exit
PB: predicated region body
PF: predicated region fallthrough
CT: control target
= control target key end

     0   :  { %v358_v0 = vmov 0.0|0.0   ;;  %vm359_vm0 = vmmov 0   ;;  %v360_v3 = vmov 0.0   ;;  %vm36_vm1 = vcmask 130048   ;;  %s452_s1 = inlined_call_operand.vmem [shape: f32[16,64], index: 1, kind: input, shape index: {}]   ;;  %s453_s3 = inlined_call_operand.vmem [shape: f32[64,8], index: 3, kind: input, shape index: {}]   ;;  %s454_s0 = inlined_call_operand.vmem [shape: f32[8,16], index: 0, kind: input, shape index: {}]   ;;  %s455_s2 = inlined_call_operand.vmem [shape: f32[1,64], index: 2, kind: input, shape index: {}]   ;;  %s456_s5 = inlined_call_operand.vmem [shape: f32[8,4], index: 5, kind: input, shape index: {}]   ;;  %s457_s4 = inlined_call_operand.vmem [shape: f32[1,8], index: 4, kind: input, shape index: {}]   ;;  %s458_s6 = inlined_call_operand.vmem [shape: f32[1,4], index: 6, kind: input, shape index: {}]   ;;  %s459_s7 = inlined_call_operand.vmem [shape: f32[8,4], index: 7, kind: output, shape index: {}]  }
   0x1   :  { %340 = vmatprep.subr.bf16.mxu0 %v358_v0  ;;  %v27_v1 = vld [vmem:[%s452_s1] sm:$0xff]  ;;  %v28_v2 = vld [vmem:[%s452_s1 + $0x8] sm:$0xff]  ;;  %313 = vmatprep.mubr.msk.f32.mxu0 %vm359_vm0, %v360_v3  ;;  %v113_v7 = vld [vmem:[%s453_s3 + $0x10] sm:$0xff]  ;;  %vm126_vm2 = vcmask 523264   ;;  %vm209_vm3 = vcmask 64512   ;;  %vm283_vm4 = vcmask 31744  }
   0x2   :  { %v341_v4 = vpack.c.bf16 %v28_v2, %v27_v1  ;;  %343 = vmatprep.subr.bf16.mxu1 %v358_v0  ;;  %v111_v5 = vld [vmem:[%s453_s3] sm:$0xff]  ;;  %v112_v6 = vld [vmem:[%s453_s3 + $0x8] sm:$0xff]  ;;  %332 = vmatprep.mubr.msk.f32.mxu1 %vm359_vm0, %v360_v3  ;;  %v114_v9 = vld [vmem:[%s453_s3 + $0x18] sm:$0xff] }
   0x3   :  { %v344_v8 = vpack.c.bf16 %v112_v6, %v111_v5  ;;  %v26_v10 = vld [vmem:[%s454_s0] sm:$0xff]  ;;  %v347_v11 = vpack.c.bf16 %v114_v9, %v113_v7  ;;  %v116_v13 = vld [vmem:[%s453_s3 + $0x28] sm:$0xff]  ;;  %v117_v15 = vld [vmem:[%s453_s3 + $0x30] sm:$0xff] }
   0x4   :  { %342 = vmatpush3.bf16.msra.mxu0 %v341_v4  ;;  %v115_v12 = vld [vmem:[%s453_s3 + $0x20] sm:$0xff]  ;;  %v118_v16 = vld [vmem:[%s453_s3 + $0x38] sm:$0xff] }
   0x5   :  { %345 = vmatpush3.bf16.msra.mxu1 %v344_v8  ;;  %335 = vmatprep.subr.mxu0 %v360_v3  ;;  %v350_v14 = vpack.c.bf16 %v116_v13, %v115_v12  ;;  %v353_v17 = vpack.c.bf16 %v118_v16, %v117_v15  ;;  %v289_v18 = vld [vmem:[%s455_s2] ss:$0 sm:$0xff] }
   0x6   :  { %346 = vmatprep.subr.bf16.mxu1 %v358_v0  ;;  %v201_v23 = vld [vmem:[%s456_s5] sm:$0xff] }
   0x7   :  { %314 = vmatmul.mubr.msk.f32.vlgmr.msra.gmra.mrb[0].mxu0 %vm36_vm1, %v26_v10  ;;  %v291_v24 = vld [vmem:[%s457_s4] ss:$0 sm:$0xff] }
   0x8   :  { %337 = vmatprep.mubr.msk.f32.mxu0 %vm359_vm0, %v360_v3  ;;  %336 = vmatpush3.msra.mxu0 %v201_v23  ;;  %v293_v29 = vld [vmem:[%s458_s6] ss:$0 sm:$0xff] }
   0x9   :  { %348 = vmatpush3.bf16.msra.mxu1 %v347_v11 }
   0xa   :  { %349 = vmatprep.subr.bf16.mxu1 %v358_v0 }
   0xd   :  { %351 = vmatpush3.bf16.msra.mxu1 %v350_v14 }
   0xe   :  { %352 = vmatprep.subr.bf16.mxu1 %v358_v0 }
  0x11   :  { %354 = vmatpush3.bf16.msra.mxu1 %v353_v17 }
  0xda   :  { %v106_v19 = vpop.f32.mrb[0].mxu0 }
  0xdb   :  { %v107_v20 = vadd.f32 %v289_v18, %v106_v19  ;;  %v315_v21 = vpop.f32.mrb[1].mxu0 }
  0xdd   :  { %v110_v22 = vmax.f32 %v107_v20, 0.0 }
  0xdf   :  { %333 = vmatmul.mubr.msk.f32.vlgmr.msra.gmra.mrb[0].mxu1 %vm126_vm2, %v110_v22 }
 0x1b2   :  { %v196_v25 = vpop.f32.mrb[0].mxu1 }
 0x1b3   :  { %v197_v26 = vadd.f32 %v291_v24, %v196_v25  ;;  %v334_v27 = vpop.f32.mrb[1].mxu1 }
 0x1b5   :  { %v200_v28 = vmax.f32 %v197_v26, 0.0 }
 0x1b7   :  { %338 = vmatmul.mubr.msk.f32.vlgmr.msra.gmra.mrb[2].mxu0 %vm209_vm3, %v200_v28 }
 0x28a   :  { %v279_v30 = vpop.f32.mrb[2].mxu0 }
 0x28b   :  { %v280_v31 = vadd.f32 %v293_v29, %v279_v30  ;;  %v339_v32 = vpop.f32.mrb[3].mxu0 }
 0x28d   :  { %284 = vst.msk [vmem:[%s459_s7] sm:$0xff] %vm283_vm4, %v280_v31 }

</bundles_post_ra>
